<compile_context>
chip_gen: v5e
topology: v5e:2x2
jax: 0.10.0
libtpu: 0.0.40
codegen_flags: <defaults>
</compile_context>

<pallas_src>
import jax
import jax.numpy as jnp
from jax.experimental import pallas as pl
from jax.experimental.pallas import tpu as pltpu


# ----------------------------------------------------------------------------
# Kernels (pure elementwise affine; log-det handled in the wrapper)
# ----------------------------------------------------------------------------
def _affine_reverse_kernel(x_ref, s_ref, t_ref, y_ref):
    # y = (x - t) * exp(-s)
    x = x_ref[...].astype(jnp.float32)          # (TB, D)
    s = s_ref[...].astype(jnp.float32)          # (1, D), VMEM-resident
    t = t_ref[...].astype(jnp.float32)          # (1, D), VMEM-resident
    inv_scale = jnp.exp(-s)                     # EUP transcendental (free slot)
    y_ref[...] = ((x - t) * inv_scale).astype(y_ref.dtype)


def _affine_forward_kernel(x_ref, s_ref, t_ref, y_ref):
    # y = x * exp(s) + t
    x = x_ref[...].astype(jnp.float32)
    s = s_ref[...].astype(jnp.float32)
    t = t_ref[...].astype(jnp.float32)
    y_ref[...] = (x * jnp.exp(s) + t).astype(y_ref.dtype)


# ----------------------------------------------------------------------------
# Wrapper
# ----------------------------------------------------------------------------
def _pick_batch_tile(B, D, itemsize):
    """Pick a batch tile: multiple of 8, double-buffered x+y tiles well under
    the smallest default scoped-VMEM limit (16 MiB on v5e)."""
    budget_bytes = 8 * 1024 * 1024          # ~8 MiB working set for x+y tiles
    per_row = 4 * D * itemsize              # 2 bufs(x) + 2 bufs(y) per row
    tb = max(8, budget_bytes // max(per_row, 1))
    tb = (tb // 8) * 8
    tb = min(tb, 2048)
    if B <= tb:
        return B                            # single block == full dim (valid)
    return tb


def _call_affine(kernel, x, log_scale, shift):
    B, D = x.shape
    s2 = log_scale.reshape(1, D)
    t2 = shift.reshape(1, D)

    TB = _pick_batch_tile(B, D, x.dtype.itemsize)
    grid = (pl.cdiv(B, TB),)

    y = pl.pallas_call(
        kernel,
        out_shape=jax.ShapeDtypeStruct((B, D), x.dtype),
        grid=grid,
        in_specs=[
            pl.BlockSpec((TB, D), lambda i: (i, 0)),   # x: tiled over batch
            pl.BlockSpec((1, D), lambda i: (0, 0)),    # s: resident
            pl.BlockSpec((1, D), lambda i: (0, 0)),    # t: resident
        ],
        out_specs=pl.BlockSpec((TB, D), lambda i: (i, 0)),  # lane-dense output
        compiler_params=pltpu.CompilerParams(
            dimension_semantics=("parallel",),
        ),
    )(x, s2, t2)
    return y


class ReferenceAffineTransform:
    """Concrete stand-in for the abstract `Transform` (global affine flow)."""

    def __init__(self, log_scale, shift):
        self.log_scale = log_scale
        self.shift = shift

    def forward(self, x):
        y = _call_affine(_affine_forward_kernel, x, self.log_scale, self.shift)
        # log-det is x-independent: compute once in plain JAX (f32), broadcast.
        ld = jnp.sum(self.log_scale.astype(jnp.float32))
        return y, jnp.full((x.shape[0],), ld, dtype=jnp.float32)

    def reverse(self, x):
        y = _call_affine(_affine_reverse_kernel, x, self.log_scale, self.shift)
        ld = -jnp.sum(self.log_scale.astype(jnp.float32))
        return y, jnp.full((x.shape[0],), ld, dtype=jnp.float32)


class InverseTransform:
    """Pallas/JAX port of simplebg InverseTransform: swaps forward/reverse."""

    def __init__(self, reference_transform):
        self._reference = reference_transform

    def forward(self, x):
        return self._reference.reverse(x)

    def reverse(self, x):
        return self._reference.forward(x)


# ----------------------------------------------------------------------------
# Demo / self-check
# ----------------------------------------------------------------------------
if __name__ == "__main__":
    key = jax.random.PRNGKey(0)
    kx, ks, kt = jax.random.split(key, 3)

    B, D = 8, 64
    x = jax.random.normal(kx, (B, D), dtype=jnp.float32)
    log_scale = 0.1 * jax.random.normal(ks, (D,), dtype=jnp.float32)
    shift = 0.5 * jax.random.normal(kt, (D,), dtype=jnp.float32)

    ref = ReferenceAffineTransform(log_scale, shift)
    inv = InverseTransform(ref)

    # InverseTransform.forward == reference.reverse
    y, logdet = inv.forward(x)
    jax.block_until_ready((y, logdet))

    # correctness check against plain-JAX reference semantics
    y_ref = (x - shift[None, :]) * jnp.exp(-log_scale)[None, :]
    ld_ref = jnp.full((B,), -jnp.sum(log_scale), dtype=jnp.float32)
    assert jnp.allclose(y, y_ref, atol=1e-5), "output mismatch"
    assert jnp.allclose(logdet, ld_ref, atol=1e-5), "logdet mismatch"

    # round trip: InverseTransform.reverse == reference.forward
    x_back, logdet_back = inv.reverse(y)
    jax.block_until_ready((x_back, logdet_back))
    assert jnp.allclose(x_back, x, atol=1e-4), "round-trip mismatch"
    assert jnp.allclose(logdet + logdet_back, 0.0, atol=1e-5), "logdet not inverse"

    print("KERNEL_OK")
</pallas_src>

<mosaic_0001>
module attributes {stable_mosaic.version = 11 : i64} {
  func.func @_affine_reverse_kernel(%arg0: i32, %arg1: memref<8x64xf32, #tpu.memory_space<vmem>>, %arg2: memref<1x64xf32, #tpu.memory_space<vmem>>, %arg3: memref<1x64xf32, #tpu.memory_space<vmem>>, %arg4: memref<8x64xf32, #tpu.memory_space<vmem>>) attributes {dimension_semantics = [#tpu.dimension_semantics<parallel>], iteration_bounds = array<i64: 1>, scalar_prefetch = 0 : i64, scratch_operands = 0 : i64, tpu.core_type = #tpu.core_type<tc>, window_params = [{transform_indices = @transform_0, window_bounds = array<i64: 8, 64>}, {pipeline_mode = #tpu.pipeline_mode<synchronous>, transform_indices = @transform_1, window_bounds = array<i64: 1, 64>}, {pipeline_mode = #tpu.pipeline_mode<synchronous>, transform_indices = @transform_2, window_bounds = array<i64: 1, 64>}, {transform_indices = @transform_3, window_bounds = array<i64: 8, 64>}]} {
    %c0 = arith.constant 0 : index
    %c0_0 = arith.constant 0 : index
    %0 = vector.load %arg1[%c0, %c0_0] : memref<8x64xf32, #tpu.memory_space<vmem>>, vector<8x64xf32>
    %c0_1 = arith.constant 0 : index
    %c0_2 = arith.constant 0 : index
    %1 = vector.load %arg2[%c0_1, %c0_2] : memref<1x64xf32, #tpu.memory_space<vmem>>, vector<1x64xf32>
    %c0_3 = arith.constant 0 : index
    %c0_4 = arith.constant 0 : index
    %2 = vector.load %arg3[%c0_3, %c0_4] : memref<1x64xf32, #tpu.memory_space<vmem>>, vector<1x64xf32>
    %cst = arith.constant 0.000000e+00 : f32
    %3 = vector.broadcast %cst : f32 to vector<1x64xf32>
    %4 = arith.subf %3, %1 : vector<1x64xf32>
    %5 = math.exp %4 : vector<1x64xf32>
    %6 = vector.broadcast %2 : vector<1x64xf32> to vector<8x64xf32>
    %7 = arith.subf %0, %6 : vector<8x64xf32>
    %8 = vector.broadcast %5 : vector<1x64xf32> to vector<8x64xf32>
    %9 = arith.mulf %7, %8 : vector<8x64xf32>
    %c0_5 = arith.constant 0 : index
    %c0_6 = arith.constant 0 : index
    %10 = vector.load %arg4[%c0_5, %c0_6] : memref<8x64xf32, #tpu.memory_space<vmem>>, vector<8x64xf32>
    tpu.vector_store %arg4[%c0_5, %c0_6], %9 {strides = array<i32>} : memref<8x64xf32, #tpu.memory_space<vmem>>, vector<8x64xf32>,
    return
  }
  func.func @transform_0(%arg0: i32) -> (i32, i32) {
    %c0_i32 = arith.constant 0 : i32
    %c0_i32_0 = arith.constant 0 : i32
    return %arg0, %c0_i32 : i32, i32
  }
  func.func @transform_1(%arg0: i32) -> (i32, i32) {
    %c0_i32 = arith.constant 0 : i32
    %c0_i32_0 = arith.constant 0 : i32
    %c0_i32_1 = arith.constant 0 : i32
    return %c0_i32, %c0_i32_0 : i32, i32
  }
  func.func @transform_2(%arg0: i32) -> (i32, i32) {
    %c0_i32 = arith.constant 0 : i32
    %c0_i32_0 = arith.constant 0 : i32
    %c0_i32_1 = arith.constant 0 : i32
    return %c0_i32, %c0_i32_0 : i32, i32
  }
  func.func @transform_3(%arg0: i32) -> (i32, i32) {
    %c0_i32 = arith.constant 0 : i32
    %c0_i32_0 = arith.constant 0 : i32
    return %arg0, %c0_i32 : i32, i32
  }
}

</mosaic_0001>

<bundles_post_ra>
// kernel: tpu_custom_call.1
= control target key start
LH: loop header
LB: loop body
LE: loop exit
PB: predicated region body
PF: predicated region fallthrough
CT: control target
= control target key end

     0   :  { %8 = vsyncpa [#allocation3], 0  ;;  %s196_s0 = inlined_call_operand.hbm [shape: f32[8,64], index: 0, kind: input, shape index: {}]   ;;  %s197_s1 = inlined_call_operand.hbm [shape: f32[1,64], index: 1, kind: input, shape index: {}]   ;;  %s198_s2 = inlined_call_operand.vmem [shape: f32[1,64], index: 2, kind: input, shape index: {}]   ;;  %s199_s3 = inlined_call_operand.hbm [shape: f32[8,64], index: 3, kind: output, shape index: {}]  }
   0x1   :  { %9 = vsyncpa [#allocation6], 0 }
   0x2   :  { %10 = vsyncpa [#allocation4], 0  ;;  %s16_s14 = sshll.u32 %s196_s0, 4  ;;  %s161_s15 = smov [#allocation2]   ;;  %s17_s14 = int_to_ptr.hbm [resolvable:$true] %s16_s14 }
   0x3   :  { %s18_s16 = sshll.u32 %s161_s15, 4  ;;  %s27_s19 = sshll.u32 %s197_s1, 4  ;;  %s19_s16 = int_to_ptr.vmem [resolvable:$true] %s18_s16  ;;  %s28_s19 = int_to_ptr.hbm [resolvable:$true] %s27_s19 }
   0x4   :  { %21 = dma.hbm_to_vmem [thread:$0]  %s17_s14, 128, %s19_s16, [#allocation3]  }
   0x5   :  { %s162_s20 = smov [#allocation5]  }
   0x6   :  { %s29_s21 = sshll.u32 %s162_s20, 4  ;;  %s30_s21 = int_to_ptr.vmem [resolvable:$true] %s29_s21 }
   0x7   :  { %32 = dma.hbm_to_vmem [thread:$0]  %s28_s19, 16, %s30_s21, [#allocation6]  }
   0x8   :  { %155 = dma.done.wait [#allocation3], 128  }
   0x9   :  { %156 = vsyncadd [#allocation3], 4294967168 }
   0xa   :  { %157 = dma.done.wait [#allocation6], 16  }
   0xb   :  { %158 = vsyncadd [#allocation6], 4294967280  ;;  %v44_v0 = vld [vmem:[#allocation5] sm:$0x1]  ;;  %v80_v3 = vld [vmem:[%s198_s2] ss:$0 sm:$0xff] }
   0xc   :  { %v46_v1 = vsub.f32 0.0, %v44_v0  ;;  %v43_v4 = vld [vmem:[#allocation2] sm:$0xff]  ;;  %s163_s1 = smov [#allocation7]   ;;  %s66_s26 = sshll.u32 %s199_s3, 4  ;;  %vm57_vm0 = vcmask 523264   ;;  %s67_s26 = int_to_ptr.hbm [resolvable:$true] %s66_s26 }
   0xd   :  { %v52_v5 = vsub.f32 %v43_v4, %v80_v3  ;;  %s64_s23 = sshll.u32 %s163_s1, 4  ;;  %s65_s23 = int_to_ptr.vmem [resolvable:$true] %s64_s23 }
   0xe   :  { %v47_v2 = vmul.f32 1.442695, %v46_v1 }
  0x10   :  { %81 = vpow2.f32 %v47_v2 }
  0x16   :  { %v82_v6 = vpop.eup %81 }
  0x17   :  { %v54_v7 = vperm.slane %v82_v6, 0 }
  0x19   :  { %v56_v8 = vmul.f32 %v54_v7, %v52_v5 }
  0x1b   :  { %58 = vst.msk [vmem:[#allocation7] sm:$0xff] %vm57_vm0, %v56_v8 }
  0x1c   :  { %69 = dma.vmem_to_hbm [thread:$0]  %s65_s23, 128, %s67_s26, [#allocation4]  }
  0x1d   :  { %159 = dma.done.wait [#allocation4], 128  }
  0x1e   :  { %160 = vsyncadd [#allocation4], 4294967168 }
  0x1f   :  { %74 = vsyncpa [#allocation3], 1 }
  0x20   :  { %75 = vsyncpa [#allocation6], 1 }
  0x21   :  { %76 = vsyncpa [#allocation4], 1 }

</bundles_post_ra>
